<compile_context>
chip_gen: v5e
topology: v5e:2x2
jax: 0.10.0
libtpu: 0.0.40
codegen_flags: <defaults>
</compile_context>

<pallas_src>
import functools

import jax
import jax.numpy as jnp
from jax import lax
from jax.experimental import pallas as pl
from jax.experimental.pallas import tpu as pltpu

_BIG_D2 = 1e9                       # sentinel "no better neighbor" squared distance
_LANE = 128
_VMEM_LIMIT_BYTES = 48 * 1024 * 1024    # < 64 MiB v7x physical; > 16/32 MiB defaults
_VMEM_BUDGET_BYTES = 40 * 1024 * 1024   # target for buffer sizing / tile auto-shrink


def _round_up(x: int, m: int) -> int:
    return (x + m - 1) // m * m


def _cdiv(a: int, b: int) -> int:
    return -(-a // b)


def _vmem_bytes(tile_i: int, tile_j: int, fp: int, x_itemsize: int) -> int:
    """Rough VMEM footprint: double-buffered input tiles + scratch + output."""
    xin = 2 * (tile_i + tile_j) * fp * x_itemsize          # x_q / x_c tiles (2 bufs each)
    vecs = 2 * 2 * (tile_i + tile_j) * 4                   # sq / label vectors
    scratch = tile_i * tile_j * 4                           # running-min scratch
    out = 2 * 8 * _LANE * 4                                 # output block
    return xin + vecs + scratch + out


def _nbn_tile_kernel(margin, xi_ref, xj_ref, sqi_ref, sqj_ref,
                     labi_ref, labj_ref, out_ref, minp_ref):
    """One (i, j) tile: update the running min of (||xj||^2 - 2<xi,xj>)."""
    j = pl.program_id(1)

    @pl.when(j == 0)
    def _init():
        minp_ref[...] = jnp.full(minp_ref.shape, _BIG_D2, jnp.float32)

    # Gram tile on the MXU (bf16 inputs, f32 accumulation); no in-kernel
    # transposes: contract the feature dims directly.
    gram = lax.dot_general(xi_ref[...], xj_ref[...], (((1,), (1,)), ((), ())),
                           preferred_element_type=jnp.float32)        # (TI, TJ)

    # Deferred-||xi||^2 form: p = ||xj||^2 - 2<xi,xj>  (d2 = p + ||xi||^2).
    p = sqj_ref[...] - 2.0 * gram                                      # (TI, TJ)

    # "Better" mask: candidate j strictly better (smaller label) than query i.
    better = labj_ref[...] < labi_ref[...]                             # (TI, TJ)
    p = jnp.where(better, p, _BIG_D2)

    # Lane-resident running min: elementwise (VPU) per step; the cross-lane
    # reduce happens only once per i-tile in the finalize block below.
    minp_ref[...] = jnp.minimum(minp_ref[...], p)

    @pl.when(j == pl.num_programs(1) - 1)
    def _finalize():
        min_p = jnp.min(minp_ref[...], axis=-1, keepdims=True)         # (TI, 1)
        # Clamp deferred to here (min is order-preserving; only sub-ulp
        # negative rounding can occur before the clamp).
        d2 = jnp.maximum(min_p + sqi_ref[...], 0.0)                    # (TI, 1)
        hinge = jnp.maximum(margin - jnp.sqrt(d2), 0.0)                # (TI, 1)
        # One partial hinge sum per i-tile (padded query rows contribute 0),
        # broadcast into a single dense (8, 128) output block.
        total = jnp.sum(hinge, axis=0, keepdims=True)                  # (1, 1)
        out_ref[...] = jnp.broadcast_to(total, out_ref.shape)


def nbn_loss(inputs, labels, margin: float = 1.0, *,
             tile_i: int | None = None, tile_j: int | None = None,
             use_bf16: bool = True):
    """inputs: (B, F), labels: (B,) -> scalar f32 NBN hinge loss."""
    inputs = jnp.asarray(inputs, jnp.float32)
    labels = jnp.asarray(labels, jnp.float32)
    B, F = inputs.shape

    Fp = max(_round_up(F, _LANE), _LANE)
    itemsize = 2 if use_bf16 else 4

    # --- candidate (j / lane) tile: 256 matches the v6e/v7x 256-wide MXU;
    #     128 keeps padding small for modest B and matches v5e's MXU width.
    if tile_j is None:
        tile_j = 256 if B >= 512 else 128
    assert tile_j % _LANE == 0, "tile_j must be a multiple of 128"

    # --- query (i / sublane) tile: large to cut candidate re-streaming.
    Bq8 = max(_round_up(B, 8), 8)
    if tile_i is None:
        tile_i = 512
    tile_i = _round_up(min(tile_i, Bq8), 8)

    # Auto-shrink tiles if the double-buffered input tiles would blow VMEM.
    while tile_i > 64 and _vmem_bytes(tile_i, tile_j, Fp, itemsize) > _VMEM_BUDGET_BYTES:
        tile_i = _round_up(max(tile_i // 2, 64), 8)
    while tile_j > _LANE and _vmem_bytes(tile_i, tile_j, Fp, itemsize) > _VMEM_BUDGET_BYTES:
        tile_j //= 2

    ni = _cdiv(Bq8, tile_i)
    # Keep >= 2 query tiles when possible so the "parallel" i axis can span
    # both TensorCores on v7x (no-op on v5e/v6e).
    if ni < 2 and Bq8 >= 16:
        tile_i = _round_up(_cdiv(Bq8, 2), 8)
        ni = _cdiv(Bq8, tile_i)

    Bq = ni * tile_i                                     # query-side padding
    Bc = max(_round_up(B, tile_j), tile_j)               # candidate-side padding
    nj = Bc // tile_j

    # Zero-pad features (contribute 0 to distances) and batch rows.
    # Query and candidate padding are decoupled (different granularities).
    x_q = jnp.zeros((Bq, Fp), jnp.float32).at[:B, :F].set(inputs)
    x_c = jnp.zeros((Bc, Fp), jnp.float32).at[:B, :F].set(inputs)

    # Squared norms / labels stay f32 (accuracy of the distance formula).
    sq = jnp.sum(inputs * inputs, axis=-1)                              # (B,)
    sq_col = jnp.zeros((Bq, 1), jnp.float32).at[:B, 0].set(sq)
    sq_row = jnp.zeros((1, Bc), jnp.float32).at[0, :B].set(sq)
    # Padded QUERY rows: label -inf  -> nothing strictly better -> hinge 0.
    # Padded CANDIDATE rows: label +inf -> never strictly better.
    lab_col = jnp.full((Bq, 1), -jnp.inf, jnp.float32).at[:B, 0].set(labels)
    lab_row = jnp.full((1, Bc), jnp.inf, jnp.float32).at[0, :B].set(labels)

    cdt = jnp.bfloat16 if use_bf16 else jnp.float32
    x_q = x_q.astype(cdt)
    x_c = x_c.astype(cdt)

    out = pl.pallas_call(
        functools.partial(_nbn_tile_kernel, float(margin)),
        out_shape=jax.ShapeDtypeStruct((ni * 8, _LANE), jnp.float32),
        grid=(ni, nj),
        in_specs=[
            pl.BlockSpec((tile_i, Fp), lambda i, j: (i, 0)),   # query rows
            pl.BlockSpec((tile_j, Fp), lambda i, j: (j, 0)),   # candidate rows
            pl.BlockSpec((tile_i, 1), lambda i, j: (i, 0)),    # ||x_i||^2 (col)
            pl.BlockSpec((1, tile_j), lambda i, j: (0, j)),    # ||x_j||^2 (row)
            pl.BlockSpec((tile_i, 1), lambda i, j: (i, 0)),    # labels_i (col)
            pl.BlockSpec((1, tile_j), lambda i, j: (0, j)),    # labels_j (row)
        ],
        out_specs=pl.BlockSpec((8, _LANE), lambda i, j: (i, 0)),
        scratch_shapes=[pltpu.VMEM((tile_i, tile_j), jnp.float32)],  # running min
        compiler_params=pltpu.CompilerParams(
            dimension_semantics=("parallel", "arbitrary"),
            vmem_limit_bytes=_VMEM_LIMIT_BYTES,
        ),
    )(x_q, x_c, sq_col, sq_row, lab_col, lab_row)

    # One partial sum per i-tile (element [i*8, 0] of each block); padded
    # query rows contributed exactly 0. Divide once by the TRUE batch size.
    partials = out.reshape(ni, 8 * _LANE)[:, 0]
    return jnp.sum(partials) / jnp.float32(B)


if __name__ == "__main__":
    key = jax.random.PRNGKey(0)
    k1, k2, k3, k4 = jax.random.split(key, 4)

    def reference(x, labels, margin=1.0):
        x = x.astype(jnp.float32)
        d2 = jnp.sum((x[:, None, :] - x[None, :, :]) ** 2, axis=-1)
        better = labels[None, :] < labels[:, None]
        d = jnp.sqrt(jnp.min(jnp.where(better, d2, _BIG_D2), axis=-1))
        return jnp.mean(jnp.maximum(margin - d, 0.0))

    # Small shape consistent with the module: (batch=8, num_features=32).
    # Scaled so the hinge is active (distances < margin).
    B, F = 8, 32
    x = 0.1 * jax.random.normal(k1, (B, F), dtype=jnp.float32)
    lab = jax.random.uniform(k2, (B,), dtype=jnp.float32)
    ref = reference(x, lab)

    loss_f32 = nbn_loss(x, lab, use_bf16=False)          # exact-f32 validation path
    jax.block_until_ready(loss_f32)
    assert jnp.allclose(loss_f32, ref, rtol=1e-4, atol=1e-5), (loss_f32, ref)

    loss_bf16 = nbn_loss(x, lab)                          # bf16 Gram perf path
    jax.block_until_ready(loss_bf16)
    assert jnp.allclose(loss_bf16, ref, rtol=2e-2, atol=2e-3), (loss_bf16, ref)

    # Multi-tile / padded path (exercises the (i, j) grid, asymmetric tiles,
    # decoupled padding and masks).
    B2, F2 = 300, 200
    x2 = 0.05 * jax.random.normal(k3, (B2, F2), dtype=jnp.float32)
    lab2 = jax.random.uniform(k4, (B2,), dtype=jnp.float32)
    ref2 = reference(x2, lab2)

    loss2_f32 = nbn_loss(x2, lab2, use_bf16=False)
    jax.block_until_ready(loss2_f32)
    assert jnp.allclose(loss2_f32, ref2, rtol=1e-4, atol=1e-5), (loss2_f32, ref2)

    loss2_bf16 = nbn_loss(x2, lab2)
    jax.block_until_ready(loss2_bf16)
    assert jnp.allclose(loss2_bf16, ref2, rtol=2e-2, atol=2e-3), (loss2_bf16, ref2)

    # Also exercise the 256-wide candidate tile (v6e/v7x MXU width).
    loss2_256 = nbn_loss(x2, lab2, tile_j=256)
    jax.block_until_ready(loss2_256)
    assert jnp.allclose(loss2_256, ref2, rtol=2e-2, atol=2e-3), (loss2_256, ref2)

    print("KERNEL_OK")
</pallas_src>

<mosaic_0001>
module attributes {stable_mosaic.version = 11 : i64} {
  func.func @_nbn_tile_kernel(%arg0: i32, %arg1: i32, %arg2: memref<8x128xf32, #tpu.memory_space<vmem>>, %arg3: memref<128x128xf32, #tpu.memory_space<vmem>>, %arg4: memref<8x1xf32, #tpu.memory_space<vmem>>, %arg5: memref<1x128xf32, #tpu.memory_space<vmem>>, %arg6: memref<8x1xf32, #tpu.memory_space<vmem>>, %arg7: memref<1x128xf32, #tpu.memory_space<vmem>>, %arg8: memref<8x128xf32, #tpu.memory_space<vmem>>, %arg9: memref<8x128xf32, #tpu.memory_space<vmem>>) attributes {dimension_semantics = [#tpu.dimension_semantics<parallel>, #tpu.dimension_semantics<arbitrary>], iteration_bounds = array<i64: 1, 1>, scalar_prefetch = 0 : i64, scratch_operands = 1 : i64, tpu.core_type = #tpu.core_type<tc>, window_params = [{transform_indices = @transform_0, window_bounds = array<i64: 8, 128>}, {transform_indices = @transform_1, window_bounds = array<i64: 128, 128>}, {transform_indices = @transform_2, window_bounds = array<i64: 8, 1>}, {transform_indices = @transform_3, window_bounds = array<i64: 1, 128>}, {transform_indices = @transform_4, window_bounds = array<i64: 8, 1>}, {transform_indices = @transform_5, window_bounds = array<i64: 1, 128>}, {transform_indices = @transform_6, window_bounds = array<i64: 8, 128>}]} {
    %c0_i32 = arith.constant 0 : i32
    %0 = arith.cmpi eq, %arg1, %c0_i32 : i32
    %1 = arith.extui %0 : i1 to i32
    %c0_i32_0 = arith.constant 0 : i32
    %2 = arith.cmpi ne, %1, %c0_i32_0 : i32
    scf.if %2 {
      %cst_18 = arith.constant 1.000000e+09 : f32
      %24 = vector.broadcast %cst_18 : f32 to vector<8x128xf32>
      %c0_19 = arith.constant 0 : index
      %c0_20 = arith.constant 0 : index
      %25 = vector.load %arg9[%c0_19, %c0_20] : memref<8x128xf32, #tpu.memory_space<vmem>>, vector<8x128xf32>
      tpu.vector_store %arg9[%c0_19, %c0_20], %24 {strides = array<i32>} : memref<8x128xf32, #tpu.memory_space<vmem>>, vector<8x128xf32>,
    } else {
    }
    %c0 = arith.constant 0 : index
    %c0_1 = arith.constant 0 : index
    %3 = vector.load %arg2[%c0, %c0_1] : memref<8x128xf32, #tpu.memory_space<vmem>>, vector<8x128xf32>
    %c0_2 = arith.constant 0 : index
    %c0_3 = arith.constant 0 : index
    %4 = vector.load %arg3[%c0_2, %c0_3] : memref<128x128xf32, #tpu.memory_space<vmem>>, vector<128x128xf32>
    %cst = arith.constant dense<0.000000e+00> : vector<8x128xf32>
    %5 = tpu.matmul %3, %4, %cst {dimension_numbers = #tpu.dot_dimension_numbers<[1], [1], [0], [0], [0, 0, 1, 0], [], []>} : vector<8x128xf32>, vector<128x128xf32>, vector<8x128xf32> -> vector<8x128xf32>
    %c0_4 = arith.constant 0 : index
    %c0_5 = arith.constant 0 : index
    %6 = vector.load %arg5[%c0_4, %c0_5] : memref<1x128xf32, #tpu.memory_space<vmem>>, vector<1x128xf32>
    %cst_6 = arith.constant 2.000000e+00 : f32
    %7 = vector.broadcast %cst_6 : f32 to vector<8x128xf32>
    %8 = arith.mulf %7, %5 : vector<8x128xf32>
    %9 = vector.broadcast %6 : vector<1x128xf32> to vector<8x128xf32>
    %10 = arith.subf %9, %8 : vector<8x128xf32>
    %c0_7 = arith.constant 0 : index
    %c0_8 = arith.constant 0 : index
    %11 = vector.load %arg7[%c0_7, %c0_8] : memref<1x128xf32, #tpu.memory_space<vmem>>, vector<1x128xf32>
    %c0_9 = arith.constant 0 : index
    %c0_10 = arith.constant 0 : index
    %12 = vector.load %arg6[%c0_9, %c0_10] : memref<8x1xf32, #tpu.memory_space<vmem>>, vector<8x1xf32>
    %13 = vector.broadcast %11 : vector<1x128xf32> to vector<8x128xf32>
    %14 = vector.broadcast %12 : vector<8x1xf32> to vector<8x128xf32>
    %15 = arith.cmpf olt, %13, %14 : vector<8x128xf32>
    %cst_11 = arith.constant 1.000000e+09 : f32
    %16 = vector.broadcast %cst_11 : f32 to vector<8x128xf32>
    %17 = arith.select %15, %10, %16 : vector<8x128xi1>, vector<8x128xf32>
    %c0_12 = arith.constant 0 : index
    %c0_13 = arith.constant 0 : index
    %18 = vector.load %arg9[%c0_12, %c0_13] : memref<8x128xf32, #tpu.memory_space<vmem>>, vector<8x128xf32>
    %19 = arith.minimumf %18, %17 : vector<8x128xf32>
    %c0_14 = arith.constant 0 : index
    %c0_15 = arith.constant 0 : index
    %20 = vector.load %arg9[%c0_14, %c0_15] : memref<8x128xf32, #tpu.memory_space<vmem>>, vector<8x128xf32>
    tpu.vector_store %arg9[%c0_14, %c0_15], %19 {strides = array<i32>} : memref<8x128xf32, #tpu.memory_space<vmem>>, vector<8x128xf32>,
    %c0_i32_16 = arith.constant 0 : i32
    %21 = arith.cmpi eq, %arg1, %c0_i32_16 : i32
    %22 = arith.extui %21 : i1 to i32
    %c0_i32_17 = arith.constant 0 : i32
    %23 = arith.cmpi ne, %22, %c0_i32_17 : i32
    scf.if %23 {
      %c0_18 = arith.constant 0 : index
      %c0_19 = arith.constant 0 : index
      %24 = vector.load %arg9[%c0_18, %c0_19] : memref<8x128xf32, #tpu.memory_space<vmem>>, vector<8x128xf32>
      %cst_20 = arith.constant dense<0x7F800000> : vector<8xf32>
      %25 = vector.multi_reduction <minimumf>, %24, %cst_20 [1] : vector<8x128xf32> to vector<8xf32>
      %26 = vector.shape_cast %25 : vector<8xf32> to vector<8x1xf32>
      %c0_21 = arith.constant 0 : index
      %c0_22 = arith.constant 0 : index
      %27 = vector.load %arg4[%c0_21, %c0_22] : memref<8x1xf32, #tpu.memory_space<vmem>>, vector<8x1xf32>
      %28 = arith.addf %26, %27 : vector<8x1xf32>
      %cst_23 = arith.constant 0.000000e+00 : f32
      %29 = vector.broadcast %cst_23 : f32 to vector<8x1xf32>
      %30 = arith.maximumf %28, %29 : vector<8x1xf32>
      %31 = math.sqrt %30 : vector<8x1xf32>
      %cst_24 = arith.constant 1.000000e+00 : f32
      %32 = vector.broadcast %cst_24 : f32 to vector<8x1xf32>
      %33 = arith.subf %32, %31 : vector<8x1xf32>
      %cst_25 = arith.constant 0.000000e+00 : f32
      %34 = vector.broadcast %cst_25 : f32 to vector<8x1xf32>
      %35 = arith.maximumf %33, %34 : vector<8x1xf32>
      %cst_26 = arith.constant dense<0.000000e+00> : vector<1xf32>
      %36 = vector.multi_reduction <add>, %35, %cst_26 [0] : vector<8x1xf32> to vector<1xf32>
      %37 = vector.shape_cast %36 : vector<1xf32> to vector<1x1xf32>
      %38 = vector.shape_cast %37 : vector<1x1xf32> to vector<1x1xf32>
      %39 = vector.broadcast %38 : vector<1x1xf32> to vector<8x128xf32>
      %c0_27 = arith.constant 0 : index
      %c0_28 = arith.constant 0 : index
      %40 = vector.load %arg8[%c0_27, %c0_28] : memref<8x128xf32, #tpu.memory_space<vmem>>, vector<8x128xf32>
      tpu.vector_store %arg8[%c0_27, %c0_28], %39 {strides = array<i32>} : memref<8x128xf32, #tpu.memory_space<vmem>>, vector<8x128xf32>,
    } else {
    }
    return
  }
  func.func @transform_0(%arg0: i32, %arg1: i32) -> (i32, i32) {
    %c0_i32 = arith.constant 0 : i32
    %c0_i32_0 = arith.constant 0 : i32
    return %arg0, %c0_i32 : i32, i32
  }
  func.func @transform_1(%arg0: i32, %arg1: i32) -> (i32, i32) {
    %c0_i32 = arith.constant 0 : i32
    %c0_i32_0 = arith.constant 0 : i32
    return %arg1, %c0_i32 : i32, i32
  }
  func.func @transform_2(%arg0: i32, %arg1: i32) -> (i32, i32) {
    %c0_i32 = arith.constant 0 : i32
    %c0_i32_0 = arith.constant 0 : i32
    return %arg0, %c0_i32 : i32, i32
  }
  func.func @transform_3(%arg0: i32, %arg1: i32) -> (i32, i32) {
    %c0_i32 = arith.constant 0 : i32
    %c0_i32_0 = arith.constant 0 : i32
    return %c0_i32, %arg1 : i32, i32
  }
  func.func @transform_4(%arg0: i32, %arg1: i32) -> (i32, i32) {
    %c0_i32 = arith.constant 0 : i32
    %c0_i32_0 = arith.constant 0 : i32
    return %arg0, %c0_i32 : i32, i32
  }
  func.func @transform_5(%arg0: i32, %arg1: i32) -> (i32, i32) {
    %c0_i32 = arith.constant 0 : i32
    %c0_i32_0 = arith.constant 0 : i32
    return %c0_i32, %arg1 : i32, i32
  }
  func.func @transform_6(%arg0: i32, %arg1: i32) -> (i32, i32) {
    %c0_i32 = arith.constant 0 : i32
    %c0_i32_0 = arith.constant 0 : i32
    return %arg0, %c0_i32 : i32, i32
  }
}

</mosaic_0001>

<bundles_post_ra>
// kernel: tpu_custom_call.1
= control target key start
LH: loop header
LB: loop body
LE: loop exit
PB: predicated region body
PF: predicated region fallthrough
CT: control target
= control target key end

     0   :  { %11 = vsyncpa [#allocation4], 0  ;;  %s281_s0 = inlined_call_operand.vmem [shape: f32[8,128], index: 0, kind: input, shape index: {}]   ;;  %s282_s1 = inlined_call_operand.hbm [shape: f32[128,128], index: 1, kind: input, shape index: {}]   ;;  %s283_s2 = inlined_call_operand.vmem [shape: f32[8,1], index: 2, kind: input, shape index: {}]   ;;  %s284_s3 = inlined_call_operand.vmem [shape: f32[1,128], index: 3, kind: input, shape index: {}]   ;;  %s285_s4 = inlined_call_operand.vmem [shape: f32[8,1], index: 4, kind: input, shape index: {}]   ;;  %s286_s5 = inlined_call_operand.vmem [shape: f32[1,128], index: 5, kind: input, shape index: {}]   ;;  %s287_s6 = inlined_call_operand.hbm [shape: f32[8,128], index: 6, kind: output, shape index: {}]  }
   0x1   :  { %12 = vsyncpa [#allocation5], 0  ;;  %s19_s23 = sshll.u32 %s282_s1, 4  ;;  %s220_s24 = smov [#allocation3]   ;;  %s20_s23 = int_to_ptr.hbm [resolvable:$true] %s19_s23 }
   0x2   :  { %s21_s25 = sshll.u32 %s220_s24, 4  ;;  %s221_s26 = smov 128   ;;  %s22_s25 = int_to_ptr.vmem [resolvable:$true] %s21_s25 }
   0x3   :  { %s222_s27 = smov 8  }
   0x4   :  { %27 = dma.hbm_to_vmem [thread:$0]  %s20_s23, 2048, %s22_s25, [#allocation4], %s221_s26, %s221_s26, %s222_s27  }
   0x5   :  { %216 = dma.done.wait [#allocation4], 2048  }
   0x6   :  { %217 = vsyncadd [#allocation4], 4294965248  ;;  %v61_v0 = vld [vmem:[#allocation3 + $0x78] sm:$0xff]  ;;  %v60_v1 = vld [vmem:[#allocation3 + $0x70] sm:$0xff]  ;;  %v223_v10 = vmov 0   ;;  %vm126_vm3 = vcmask 7168  }
   0x7   :  { %62 = vmatpush.xpose.msra.mxu0 %v61_v0  ;;  %v59_v2 = vld [vmem:[#allocation3 + $0x68] sm:$0xff]  ;;  %v58_v3 = vld [vmem:[#allocation3 + $0x60] sm:$0xff]  ;;  %v57_v4 = vld [vmem:[#allocation3 + $0x58] sm:$0xff]  ;;  %162 = vset.pattern.permute.xlu0 %v223_v10  ;;  %s147_s12 = sshll.u32 %s287_s6, 4  ;;  %s148_s12 = int_to_ptr.hbm [resolvable:$true] %s147_s12 }
   0x8   :  { %v56_v5 = vld [vmem:[#allocation3 + $0x50] sm:$0xff]  ;;  %v55_v6 = vld [vmem:[#allocation3 + $0x48] sm:$0xff]  ;;  %v54_v7 = vld [vmem:[#allocation3 + $0x40] sm:$0xff]  ;;  %163 = vset.pattern.permute.xlu1 %v223_v10 }
   0x9   :  { %v53_v8 = vld [vmem:[#allocation3 + $0x38] sm:$0xff]  ;;  %v89_v9 = vld [vmem:[%s285_s4] sm:$0xff]  ;;  %v52_v11 = vld [vmem:[#allocation3 + $0x30] sm:$0xff] }
   0xa   :  { %95 = vperm.xlu0 %162, %v89_v9   ;;  %v51_v12 = vld [vmem:[#allocation3 + $0x28] sm:$0xff]  ;;  %v50_v13 = vld [vmem:[#allocation3 + $0x20] sm:$0xff]  ;;  %v49_v14 = vld [vmem:[#allocation3 + $0x18] sm:$0xff] }
   0xb   :  { %63 = vmatpush.xpose.msra.mxu0 %v60_v1  ;;  %v48_v15 = vld [vmem:[#allocation3 + $0x10] sm:$0xff]  ;;  %v47_v16 = vld [vmem:[#allocation3 + $0x8] sm:$0xff]  ;;  %v46_v17 = vld [vmem:[#allocation3] sm:$0xff] }
   0xc   :  { %v45_v18 = vld [vmem:[%s281_s0] sm:$0xff]  ;;  %s224_s0 = smov [#allocation6]  }
   0xd   :  { %v165_v19 = vld [vmem:[%s286_s5] ss:$0 sm:$0xff] }
   0xe   :  { %v164_v20 = vld [vmem:[%s284_s3] ss:$0 sm:$0xff] }
   0xf   :  { %64 = vmatpush.xpose.msra.mxu0 %v59_v2  ;;  %v109_v27 = vld [vmem:[%s283_s2] sm:$0xff]  ;;  %s145_s2 = sshll.u32 %s224_s0, 4  ;;  %s146_s2 = int_to_ptr.vmem [resolvable:$true] %s145_s2 }
  0x13   :  { %65 = vmatpush.xpose.msra.mxu0 %v58_v3 }
  0x17   :  { %66 = vmatpush.xpose.msra.mxu0 %v57_v4 }
  0x1b   :  { %67 = vmatpush.xpose.msra.mxu0 %v56_v5 }
  0x1f   :  { %68 = vmatpush.xpose.msra.mxu0 %v55_v6 }
  0x23   :  { %69 = vmatpush.xpose.msra.mxu0 %v54_v7 }
  0x27   :  { %70 = vmatpush.xpose.msra.mxu0 %v53_v8 }
  0x2b   :  { %71 = vmatpush.xpose.msra.mxu0 %v52_v11 }
  0x2f   :  { %72 = vmatpush.xpose.msra.mxu0 %v51_v12 }
  0x33   :  { %73 = vmatpush.xpose.msra.mxu0 %v50_v13 }
  0x37   :  { %74 = vmatpush.xpose.msra.mxu0 %v49_v14 }
  0x3b   :  { %75 = vmatpush.xpose.msra.mxu0 %v48_v15 }
  0x3f   :  { %76 = vmatpush.xpose.msra.mxu0 %v47_v16 }
  0x43   :  { %77 = vmatpush.xpose.msra.mxu0 %v46_v17 }
  0x46   :  { %78 = vmatmul.f32.vlgmr.msra.gmra.mxu0 %v45_v18 }
  0x7c   :  { %v96_v21 = vpop.permute.xlu0 %95 }
  0x7d   :  { %vm98_vm0 = vcmp.lt.f32.partialorder %v165_v19, %v96_v21 }
  0xc3   :  { %v79_v22 = vpop.f32.mrf.mxu0 }
  0xc4   :  { %v83_v23 = vmul.f32 2.0, %v79_v22 }
  0xc6   :  { %v87_v24 = vsub.f32 %v164_v20, %v83_v23 }
  0xc8   :  { %v99_v25 = vsel %vm98_vm0, %v87_v24, 1e+09 }
  0xc9   :  { %v101_v26 = vmin.f32 %v99_v25, 1e+09 }
  0xcb   :  { %107 = vmin.xlane.f32.xlu0 %v101_v26 }
 0x13e   :  { %v108_v28 = vpop.xlane.xlu0 %107 }
 0x13f   :  { %v110_v29 = vadd.f32 %v109_v27, %v108_v28 }
 0x141   :  { %v111_v30 = vmax.f32 %v110_v29, 0.0 }
 0x143   :  { %166 = vrsqrt.f32 %v111_v30  ;;  %vm119_vm1 = vcmp.eq.f32.partialorder %v111_v30, inf  ;;  %v122_v38 = vand.u32 2147483648, %v111_v30  ;;  %vm121_vm2 = vcmp.eq.f32.partialorder %v111_v30, 0.0 }
 0x149   :  { %v167_v31 = vpop.eup %166 }
 0x14a   :  { %v113_v32 = vmul.f32 %v167_v31, %v111_v30 }
 0x14c   :  { %v114_v33 = vmul.f32 %v167_v31, %v113_v32 }
 0x14e   :  { %v115_v34 = vmul.f32 0.5, %v114_v33 }
 0x150   :  { %v116_v35 = vsub.f32 1.5, %v115_v34 }
 0x152   :  { %v117_v36 = vmul.f32 %v167_v31, %v116_v35 }
 0x154   :  { %v118_v37 = vmul.f32 %v117_v36, %v111_v30 }
 0x156   :  { %v120_v39 = vsel %vm119_vm1, %v111_v30, %v118_v37 }
 0x157   :  { %v123_v40 = vsel %vm121_vm2, %v122_v38, %v120_v39 }
 0x158   :  { %v124_v41 = vsub.f32 1.0, %v123_v40 }
 0x15a   :  { %v125_v42 = vmax.f32 %v124_v41, 0.0 }
 0x15c   :  { %v127_v43 = vsel %vm126_vm3, %v125_v42, 0.0 }
 0x15d   :  { %v128_v44 = vrot.slane %v127_v43, 4 }
 0x15f   :  { %v129_v45 = vadd.f32 %v128_v44, %v127_v43 }
 0x161   :  { %v130_v46 = vrot.slane %v129_v45, 2 }
 0x163   :  { %v131_v47 = vadd.f32 %v130_v46, %v129_v45 }
 0x165   :  { %v132_v48 = vrot.slane %v131_v47, 1 }
 0x167   :  { %v133_v49 = vadd.f32 %v132_v48, %v131_v47 }
 0x169   :  { %136 = vperm.xlu1 %163, %v133_v49  }
 0x1db   :  { %v137_v50 = vpop.permute.xlu1 %136 }
 0x1dc   :  { %139 = vst [vmem:[#allocation6] sm:$0xff] %v137_v50 }
 0x1dd   :  { %150 = dma.vmem_to_hbm [thread:$0]  %s146_s2, 128, %s148_s12, [#allocation5]  }
 0x1de   :  { %218 = dma.done.wait [#allocation5], 128  }
 0x1df   :  { %219 = vsyncadd [#allocation5], 4294967168 }
 0x1e0   :  { %155 = vsyncpa [#allocation4], 1 }
 0x1e1   :  { %156 = vsyncpa [#allocation5], 1 }

</bundles_post_ra>
